<compile_context>
chip_gen: v5e
topology: v5e:2x2
jax: 0.10.0
libtpu: 0.0.40
codegen_flags: <defaults>
</compile_context>

<pallas_src>
import jax
import jax.numpy as jnp
from jax.experimental import pallas as pl
from jax.experimental.pallas import tpu as pltpu

# Small synthetic dims (module uses 4096 -> 2560; scaled down, lane-aligned).
B = 2           # batch
S = 16          # sequence length
NP = 5          # patch tokens per row (t.arange(5) in the module)
BN = B * NP     # batched matmul M dimension
D_IN = 512      # activation feature dim (stand-in for 4096)
D_MODEL = 256   # meta-model hidden dim (stand-in for 2560)
TK = 256        # K tile of the projection (multiple of 128)
KSTEPS = D_IN // TK
VOCAB = 128
PATCH_TOKEN_ID = 7
PAD_TOKEN_ID = 0


# ----------------------------------------------------------------------------
# Pallas kernel: K-tiled Linear(D_IN, D_MODEL) over all B*NP activation rows,
# then a DMA scatter of the projected rows into the patch-token positions of
# the HBM-resident (aliased input==output) layer-0 input embeddings.
# ----------------------------------------------------------------------------
def _patch_kernel(pos_ref, act_ref, w_ref, b_ref, emb_hbm_ref, out_hbm_ref,
                  acc_ref, sem):
    del emb_hbm_ref  # same HBM buffer as out_hbm_ref (input_output_aliases)
    k = pl.program_id(0)

    @pl.when(k == 0)
    def _init():
        acc_ref[...] = jnp.zeros_like(acc_ref)

    # bf16 x bf16 inputs, f32 accumulation on the MXU, tiled over D_IN.
    acc_ref[...] += jnp.dot(act_ref[...], w_ref[...],
                            preferred_element_type=jnp.float32)

    @pl.when(k == pl.num_programs(0) - 1)
    def _finalize():
        # Bias applied exactly once, after the last K tile.
        acc_ref[...] += b_ref[...]
        # Scatter the BN projected rows straight into the aliased HBM
        # embedding slab: only NP*B rows of HBM write traffic instead of a
        # full slab read + write through VMEM.  Positions are distinct, so
        # all row DMAs can be in flight concurrently.
        copies = []
        for r in range(BN):
            p = pos_ref[r]                               # flat row index b*S + seq
            cp = pltpu.make_async_copy(
                acc_ref.at[pl.ds(r, 1), :],
                out_hbm_ref.at[pl.ds(p, 1), :],
                sem.at[r])
            cp.start()
            copies.append(cp)
        for cp in copies:
            cp.wait()


def patch_embeddings(pos_flat, act_flat_bf16, w_bf16, bias, emb_flat):
    return pl.pallas_call(
        _patch_kernel,
        out_shape=jax.ShapeDtypeStruct((B * S, D_MODEL), jnp.float32),
        grid_spec=pltpu.PrefetchScalarGridSpec(
            num_scalar_prefetch=1,              # pos_flat -> SMEM
            grid=(KSTEPS,),                     # reduction over D_IN
            in_specs=[
                pl.BlockSpec((BN, TK), lambda k, pos: (0, k)),        # activations
                pl.BlockSpec((TK, D_MODEL), lambda k, pos: (k, 0)),   # weight tile
                pl.BlockSpec((1, D_MODEL), lambda k, pos: (0, 0)),    # bias
                pl.BlockSpec(memory_space=pl.ANY),                    # embeddings (HBM)
            ],
            out_specs=pl.BlockSpec(memory_space=pl.ANY),              # aliased slab
            scratch_shapes=[pltpu.VMEM((BN, D_MODEL), jnp.float32),
                            pltpu.SemaphoreType.DMA((BN,))],
        ),
        # Flattened inputs (incl. scalar prefetch): 0=pos, 1=act, 2=w, 3=bias, 4=emb.
        input_output_aliases={4: 0},
        compiler_params=pltpu.CompilerParams(
            dimension_semantics=("arbitrary",)),
    )(pos_flat, act_flat_bf16, w_bf16, bias, emb_flat)


# ----------------------------------------------------------------------------
# Wrapper reproducing Phi2MetaModel.forward (eval mode -> no noise branch).
# ----------------------------------------------------------------------------
def phi2_meta_forward(input_ids, activations, labels, emb_table, w, b):
    # self.patch_mask = questions['input_ids'] == self.patch_token_id
    patch_mask = input_ids == PATCH_TOKEN_ID                       # (B, S) bool

    # labels[(labels == patch_id) & (labels == pad_id)] = -100
    # NOTE: mirrors the PyTorch source literally; with patch_id != pad_id this
    # condition is always False. Tiny elementwise op -> plain jnp (XLA fuses it).
    labels_masked = jnp.where(
        (labels == PATCH_TOKEN_ID) & (labels == PAD_TOKEN_ID),
        jnp.int32(-100), labels)

    # self.input_model_activations = activations.squeeze(1); batch the Linear
    # over all B*NP rows so the MXU sees one M=B*NP matmul, not B M=5 matmuls.
    acts = jnp.squeeze(activations, axis=1).reshape(BN, D_IN)
    acts_bf16 = acts.astype(jnp.bfloat16)
    w_bf16 = w.astype(jnp.bfloat16)

    # Flattened scatter positions, row-major order (matches t.where(patch_mask)
    # + t.arange(5).repeat(batch_size)). Assumes exactly NP patch tokens/row.
    bidx, sidx = jnp.nonzero(patch_mask, size=BN)
    pos_flat = (bidx * S + sidx).astype(jnp.int32)                  # (B*NP,)

    # Embedding lookup (glue; what meta_model feeds layer 0's pre-hook).  The
    # slab never enters the kernel's VMEM: it is aliased to the kernel output
    # and only the patched rows are DMA-written.
    # TODO(synk): at real vocab/seq sizes, fuse this gather into the kernel
    # (per-row DMA gather with scalar-prefetched ids) to save an HBM round trip.
    emb_flat = jnp.take(emb_table, input_ids, axis=0).reshape(B * S, D_MODEL)

    patched = patch_embeddings(pos_flat, acts_bf16, w_bf16, b, emb_flat)

    # TODO(synk): the pretrained Phi-2 transformer layers + LM head + CE loss
    # (self.meta_model(**questions, labels=labels)) have no self-contained
    # Pallas equivalent; we return the patched layer-0 input embeddings and
    # the masked labels instead of the CausalLM outputs.
    return patched.reshape(B, S, D_MODEL), labels_masked


if __name__ == "__main__":
    key = jax.random.PRNGKey(0)
    k1, k2, k3, k4, k5, k6 = jax.random.split(key, 6)

    # input_ids: random ids (>= 10 so they never collide with the patch id),
    # then exactly NP patch tokens per row.
    input_ids = jax.random.randint(k1, (B, S), 10, VOCAB, dtype=jnp.int32)
    patch_pos = jnp.array([[1, 3, 5, 7, 9], [0, 2, 4, 6, 8]], dtype=jnp.int32)
    input_ids = input_ids.at[jnp.arange(B)[:, None], patch_pos].set(PATCH_TOKEN_ID)

    labels = jax.random.randint(k6, (B, S), 0, VOCAB, dtype=jnp.int32)
    activations = jax.random.normal(k2, (B, 1, NP, D_IN), dtype=jnp.float32)

    # Deterministic parameters (stand-ins for the checkpoint weights).
    emb_table = 0.02 * jax.random.normal(k3, (VOCAB, D_MODEL), dtype=jnp.float32)
    w = jax.random.normal(k4, (D_IN, D_MODEL), dtype=jnp.float32) / jnp.sqrt(D_IN)
    b = 0.01 * jax.random.normal(k5, (1, D_MODEL), dtype=jnp.float32)

    fwd = jax.jit(phi2_meta_forward)
    patched, labels_masked = fwd(input_ids, activations, labels, emb_table, w, b)
    jax.block_until_ready((patched, labels_masked))

    # Plain-JAX reference check (same bf16 inputs, f32 accumulation).
    acts = jnp.squeeze(activations, axis=1)
    proj_ref = (jnp.dot(acts.reshape(BN, D_IN).astype(jnp.bfloat16),
                        w.astype(jnp.bfloat16),
                        preferred_element_type=jnp.float32) + b).reshape(B, NP, D_MODEL)
    patch_mask = input_ids == PATCH_TOKEN_ID
    bidx, sidx = jnp.nonzero(patch_mask, size=BN)
    pidx = jnp.tile(jnp.arange(NP), B)
    emb_ref = jnp.take(emb_table, input_ids, axis=0)
    patched_ref = emb_ref.at[bidx, sidx].set(proj_ref[bidx, pidx])
    labels_ref = jnp.where((labels == PATCH_TOKEN_ID) & (labels == PAD_TOKEN_ID),
                           -100, labels)

    assert jnp.allclose(patched, patched_ref, atol=1e-3, rtol=1e-3)
    assert jnp.array_equal(labels_masked, labels_ref)
    print("KERNEL_OK")
</pallas_src>

<mosaic_0001>
module attributes {stable_mosaic.version = 11 : i64} {
  func.func @_patch_kernel(%arg0: i32, %arg1: memref<10xi32, #tpu.memory_space<smem>>, %arg2: memref<10x256xbf16, #tpu.memory_space<vmem>>, %arg3: memref<256x256xbf16, #tpu.memory_space<vmem>>, %arg4: memref<1x256xf32, #tpu.memory_space<vmem>>, %arg5: memref<32x256xf32, #tpu.memory_space<any>>, %arg6: memref<32x256xf32, #tpu.memory_space<any>>, %arg7: memref<10x256xf32, #tpu.memory_space<vmem>>, %arg8: memref<10x!tpu.dma_semaphore, #tpu.memory_space<semaphore_mem>>) attributes {dimension_semantics = [#tpu.dimension_semantics<arbitrary>], iteration_bounds = array<i64: 2>, scalar_prefetch = 1 : i64, scratch_operands = 2 : i64, tpu.core_type = #tpu.core_type<tc>, window_params = [{transform_indices = @transform_0, window_bounds = array<i64: 10, 256>}, {transform_indices = @transform_1, window_bounds = array<i64: 256, 256>}, {pipeline_mode = #tpu.pipeline_mode<synchronous>, transform_indices = @transform_2, window_bounds = array<i64: 1, 256>}, {}, {}]} {
    %c0_i32 = arith.constant 0 : i32
    %0 = arith.cmpi eq, %arg0, %c0_i32 : i32
    %1 = arith.extui %0 : i1 to i32
    %c0_i32_0 = arith.constant 0 : i32
    %2 = arith.cmpi ne, %1, %c0_i32_0 : i32
    scf.if %2 {
      %cst_9 = arith.constant 0.000000e+00 : f32
      %12 = vector.broadcast %cst_9 : f32 to vector<10x256xf32>
      %c0_10 = arith.constant 0 : index
      %c0_11 = arith.constant 0 : index
      %13 = vector.load %arg7[%c0_10, %c0_11] : memref<10x256xf32, #tpu.memory_space<vmem>>, vector<10x256xf32>
      tpu.vector_store %arg7[%c0_10, %c0_11], %12 {strides = array<i32>} : memref<10x256xf32, #tpu.memory_space<vmem>>, vector<10x256xf32>,
    } else {
    }
    %c0 = arith.constant 0 : index
    %c0_1 = arith.constant 0 : index
    %3 = vector.load %arg7[%c0, %c0_1] : memref<10x256xf32, #tpu.memory_space<vmem>>, vector<10x256xf32>
    %c0_2 = arith.constant 0 : index
    %c0_3 = arith.constant 0 : index
    %4 = vector.load %arg2[%c0_2, %c0_3] : memref<10x256xbf16, #tpu.memory_space<vmem>>, vector<10x256xbf16>
    %c0_4 = arith.constant 0 : index
    %c0_5 = arith.constant 0 : index
    %5 = vector.load %arg3[%c0_4, %c0_5] : memref<256x256xbf16, #tpu.memory_space<vmem>>, vector<256x256xbf16>
    %cst = arith.constant dense<0.000000e+00> : vector<10x256xf32>
    %6 = tpu.matmul %4, %5, %cst {dimension_numbers = #tpu.dot_dimension_numbers<[1], [0], [0], [1], [0, 0, 1, 1], [], []>} : vector<10x256xbf16>, vector<256x256xbf16>, vector<10x256xf32> -> vector<10x256xf32>
    %7 = arith.addf %3, %6 : vector<10x256xf32>
    %c0_6 = arith.constant 0 : index
    %c0_7 = arith.constant 0 : index
    %8 = vector.load %arg7[%c0_6, %c0_7] : memref<10x256xf32, #tpu.memory_space<vmem>>, vector<10x256xf32>
    tpu.vector_store %arg7[%c0_6, %c0_7], %7 {strides = array<i32>} : memref<10x256xf32, #tpu.memory_space<vmem>>, vector<10x256xf32>,
    %c1_i32 = arith.constant 1 : i32
    %9 = arith.cmpi eq, %arg0, %c1_i32 : i32
    %10 = arith.extui %9 : i1 to i32
    %c0_i32_8 = arith.constant 0 : i32
    %11 = arith.cmpi ne, %10, %c0_i32_8 : i32
    scf.if %11 {
      %c0_9 = arith.constant 0 : index
      %c0_10 = arith.constant 0 : index
      %12 = vector.load %arg7[%c0_9, %c0_10] : memref<10x256xf32, #tpu.memory_space<vmem>>, vector<10x256xf32>
      %c0_11 = arith.constant 0 : index
      %c0_12 = arith.constant 0 : index
      %13 = vector.load %arg4[%c0_11, %c0_12] : memref<1x256xf32, #tpu.memory_space<vmem>>, vector<1x256xf32>
      %14 = vector.broadcast %13 : vector<1x256xf32> to vector<10x256xf32>
      %15 = arith.addf %12, %14 : vector<10x256xf32>
      %c0_13 = arith.constant 0 : index
      %c0_14 = arith.constant 0 : index
      %16 = vector.load %arg7[%c0_13, %c0_14] : memref<10x256xf32, #tpu.memory_space<vmem>>, vector<10x256xf32>
      tpu.vector_store %arg7[%c0_13, %c0_14], %15 {strides = array<i32>} : memref<10x256xf32, #tpu.memory_space<vmem>>, vector<10x256xf32>,
      %c0_15 = arith.constant 0 : index
      %17 = memref.load %arg1[%c0_15] : memref<10xi32, #tpu.memory_space<smem>>
      %c0_i32_16 = arith.constant 0 : i32
      %c0_i32_17 = arith.constant 0 : i32
      %c0_i32_18 = arith.constant 0 : i32
      %18 = tpu.memref_slice %arg7[%c0_i32_17, %c0_i32_18] : memref<10x256xf32, #tpu.memory_space<vmem>> -> memref<1x256xf32, #tpu.memory_space<vmem>>
      %c0_i32_19 = arith.constant 0 : i32
      %19 = tpu.memref_slice %arg6[%17, %c0_i32_19] : memref<32x256xf32, #tpu.memory_space<any>> -> memref<1x256xf32, #tpu.memory_space<any>>
      %20 = tpu.memref_slice %arg8[%c0_i32_16] : memref<10x!tpu.dma_semaphore, #tpu.memory_space<semaphore_mem>> -> memref<1x!tpu.dma_semaphore, #tpu.memory_space<semaphore_mem>>
      %21 = tpu.memref_squeeze %20 : memref<1x!tpu.dma_semaphore, #tpu.memory_space<semaphore_mem>> -> memref<!tpu.dma_semaphore, #tpu.memory_space<semaphore_mem>>
      tpu.enqueue_dma source(%18 : memref<1x256xf32, #tpu.memory_space<vmem>>) target(%19 : memref<1x256xf32, #tpu.memory_space<any>>) target_semaphore(%21 : memref<!tpu.dma_semaphore, #tpu.memory_space<semaphore_mem>>)
      %c1 = arith.constant 1 : index
      %22 = memref.load %arg1[%c1] : memref<10xi32, #tpu.memory_space<smem>>
      %c1_i32_20 = arith.constant 1 : i32
      %c1_i32_21 = arith.constant 1 : i32
      %c0_i32_22 = arith.constant 0 : i32
      %23 = tpu.memref_slice %arg7[%c1_i32_21, %c0_i32_22] : memref<10x256xf32, #tpu.memory_space<vmem>> -> memref<1x256xf32, #tpu.memory_space<vmem>>
      %c0_i32_23 = arith.constant 0 : i32
      %24 = tpu.memref_slice %arg6[%22, %c0_i32_23] : memref<32x256xf32, #tpu.memory_space<any>> -> memref<1x256xf32, #tpu.memory_space<any>>
      %25 = tpu.memref_slice %arg8[%c1_i32_20] : memref<10x!tpu.dma_semaphore, #tpu.memory_space<semaphore_mem>> -> memref<1x!tpu.dma_semaphore, #tpu.memory_space<semaphore_mem>>
      %26 = tpu.memref_squeeze %25 : memref<1x!tpu.dma_semaphore, #tpu.memory_space<semaphore_mem>> -> memref<!tpu.dma_semaphore, #tpu.memory_space<semaphore_mem>>
      tpu.enqueue_dma source(%23 : memref<1x256xf32, #tpu.memory_space<vmem>>) target(%24 : memref<1x256xf32, #tpu.memory_space<any>>) target_semaphore(%26 : memref<!tpu.dma_semaphore, #tpu.memory_space<semaphore_mem>>)
      %c2 = arith.constant 2 : index
      %27 = memref.load %arg1[%c2] : memref<10xi32, #tpu.memory_space<smem>>
      %c2_i32 = arith.constant 2 : i32
      %c2_i32_24 = arith.constant 2 : i32
      %c0_i32_25 = arith.constant 0 : i32
      %28 = tpu.memref_slice %arg7[%c2_i32_24, %c0_i32_25] : memref<10x256xf32, #tpu.memory_space<vmem>> -> memref<1x256xf32, #tpu.memory_space<vmem>>
      %c0_i32_26 = arith.constant 0 : i32
      %29 = tpu.memref_slice %arg6[%27, %c0_i32_26] : memref<32x256xf32, #tpu.memory_space<any>> -> memref<1x256xf32, #tpu.memory_space<any>>
      %30 = tpu.memref_slice %arg8[%c2_i32] : memref<10x!tpu.dma_semaphore, #tpu.memory_space<semaphore_mem>> -> memref<1x!tpu.dma_semaphore, #tpu.memory_space<semaphore_mem>>
      %31 = tpu.memref_squeeze %30 : memref<1x!tpu.dma_semaphore, #tpu.memory_space<semaphore_mem>> -> memref<!tpu.dma_semaphore, #tpu.memory_space<semaphore_mem>>
      tpu.enqueue_dma source(%28 : memref<1x256xf32, #tpu.memory_space<vmem>>) target(%29 : memref<1x256xf32, #tpu.memory_space<any>>) target_semaphore(%31 : memref<!tpu.dma_semaphore, #tpu.memory_space<semaphore_mem>>)
      %c3 = arith.constant 3 : index
      %32 = memref.load %arg1[%c3] : memref<10xi32, #tpu.memory_space<smem>>
      %c3_i32 = arith.constant 3 : i32
      %c3_i32_27 = arith.constant 3 : i32
      %c0_i32_28 = arith.constant 0 : i32
      %33 = tpu.memref_slice %arg7[%c3_i32_27, %c0_i32_28] : memref<10x256xf32, #tpu.memory_space<vmem>> -> memref<1x256xf32, #tpu.memory_space<vmem>>
      %c0_i32_29 = arith.constant 0 : i32
      %34 = tpu.memref_slice %arg6[%32, %c0_i32_29] : memref<32x256xf32, #tpu.memory_space<any>> -> memref<1x256xf32, #tpu.memory_space<any>>
      %35 = tpu.memref_slice %arg8[%c3_i32] : memref<10x!tpu.dma_semaphore, #tpu.memory_space<semaphore_mem>> -> memref<1x!tpu.dma_semaphore, #tpu.memory_space<semaphore_mem>>
      %36 = tpu.memref_squeeze %35 : memref<1x!tpu.dma_semaphore, #tpu.memory_space<semaphore_mem>> -> memref<!tpu.dma_semaphore, #tpu.memory_space<semaphore_mem>>
      tpu.enqueue_dma source(%33 : memref<1x256xf32, #tpu.memory_space<vmem>>) target(%34 : memref<1x256xf32, #tpu.memory_space<any>>) target_semaphore(%36 : memref<!tpu.dma_semaphore, #tpu.memory_space<semaphore_mem>>)
      %c4 = arith.constant 4 : index
      %37 = memref.load %arg1[%c4] : memref<10xi32, #tpu.memory_space<smem>>
      %c4_i32 = arith.constant 4 : i32
      %c4_i32_30 = arith.constant 4 : i32
      %c0_i32_31 = arith.constant 0 : i32
      %38 = tpu.memref_slice %arg7[%c4_i32_30, %c0_i32_31] : memref<10x256xf32, #tpu.memory_space<vmem>> -> memref<1x256xf32, #tpu.memory_space<vmem>>
      %c0_i32_32 = arith.constant 0 : i32
      %39 = tpu.memref_slice %arg6[%37, %c0_i32_32] : memref<32x256xf32, #tpu.memory_space<any>> -> memref<1x256xf32, #tpu.memory_space<any>>
      %40 = tpu.memref_slice %arg8[%c4_i32] : memref<10x!tpu.dma_semaphore, #tpu.memory_space<semaphore_mem>> -> memref<1x!tpu.dma_semaphore, #tpu.memory_space<semaphore_mem>>
      %41 = tpu.memref_squeeze %40 : memref<1x!tpu.dma_semaphore, #tpu.memory_space<semaphore_mem>> -> memref<!tpu.dma_semaphore, #tpu.memory_space<semaphore_mem>>
      tpu.enqueue_dma source(%38 : memref<1x256xf32, #tpu.memory_space<vmem>>) target(%39 : memref<1x256xf32, #tpu.memory_space<any>>) target_semaphore(%41 : memref<!tpu.dma_semaphore, #tpu.memory_space<semaphore_mem>>)
      %c5 = arith.constant 5 : index
      %42 = memref.load %arg1[%c5] : memref<10xi32, #tpu.memory_space<smem>>
      %c5_i32 = arith.constant 5 : i32
      %c5_i32_33 = arith.constant 5 : i32
      %c0_i32_34 = arith.constant 0 : i32
      %43 = tpu.memref_slice %arg7[%c5_i32_33, %c0_i32_34] : memref<10x256xf32, #tpu.memory_space<vmem>> -> memref<1x256xf32, #tpu.memory_space<vmem>>
      %c0_i32_35 = arith.constant 0 : i32
      %44 = tpu.memref_slice %arg6[%42, %c0_i32_35] : memref<32x256xf32, #tpu.memory_space<any>> -> memref<1x256xf32, #tpu.memory_space<any>>
      %45 = tpu.memref_slice %arg8[%c5_i32] : memref<10x!tpu.dma_semaphore, #tpu.memory_space<semaphore_mem>> -> memref<1x!tpu.dma_semaphore, #tpu.memory_space<semaphore_mem>>
      %46 = tpu.memref_squeeze %45 : memref<1x!tpu.dma_semaphore, #tpu.memory_space<semaphore_mem>> -> memref<!tpu.dma_semaphore, #tpu.memory_space<semaphore_mem>>
      tpu.enqueue_dma source(%43 : memref<1x256xf32, #tpu.memory_space<vmem>>) target(%44 : memref<1x256xf32, #tpu.memory_space<any>>) target_semaphore(%46 : memref<!tpu.dma_semaphore, #tpu.memory_space<semaphore_mem>>)
      %c6 = arith.constant 6 : index
      %47 = memref.load %arg1[%c6] : memref<10xi32, #tpu.memory_space<smem>>
      %c6_i32 = arith.constant 6 : i32
      %c6_i32_36 = arith.constant 6 : i32
      %c0_i32_37 = arith.constant 0 : i32
      %48 = tpu.memref_slice %arg7[%c6_i32_36, %c0_i32_37] : memref<10x256xf32, #tpu.memory_space<vmem>> -> memref<1x256xf32, #tpu.memory_space<vmem>>
      %c0_i32_38 = arith.constant 0 : i32
      %49 = tpu.memref_slice %arg6[%47, %c0_i32_38] : memref<32x256xf32, #tpu.memory_space<any>> -> memref<1x256xf32, #tpu.memory_space<any>>
      %50 = tpu.memref_slice %arg8[%c6_i32] : memref<10x!tpu.dma_semaphore, #tpu.memory_space<semaphore_mem>> -> memref<1x!tpu.dma_semaphore, #tpu.memory_space<semaphore_mem>>
      %51 = tpu.memref_squeeze %50 : memref<1x!tpu.dma_semaphore, #tpu.memory_space<semaphore_mem>> -> memref<!tpu.dma_semaphore, #tpu.memory_space<semaphore_mem>>
      tpu.enqueue_dma source(%48 : memref<1x256xf32, #tpu.memory_space<vmem>>) target(%49 : memref<1x256xf32, #tpu.memory_space<any>>) target_semaphore(%51 : memref<!tpu.dma_semaphore, #tpu.memory_space<semaphore_mem>>)
      %c7 = arith.constant 7 : index
      %52 = memref.load %arg1[%c7] : memref<10xi32, #tpu.memory_space<smem>>
      %c7_i32 = arith.constant 7 : i32
      %c7_i32_39 = arith.constant 7 : i32
      %c0_i32_40 = arith.constant 0 : i32
      %53 = tpu.memref_slice %arg7[%c7_i32_39, %c0_i32_40] : memref<10x256xf32, #tpu.memory_space<vmem>> -> memref<1x256xf32, #tpu.memory_space<vmem>>
      %c0_i32_41 = arith.constant 0 : i32
      %54 = tpu.memref_slice %arg6[%52, %c0_i32_41] : memref<32x256xf32, #tpu.memory_space<any>> -> memref<1x256xf32, #tpu.memory_space<any>>
      %55 = tpu.memref_slice %arg8[%c7_i32] : memref<10x!tpu.dma_semaphore, #tpu.memory_space<semaphore_mem>> -> memref<1x!tpu.dma_semaphore, #tpu.memory_space<semaphore_mem>>
      %56 = tpu.memref_squeeze %55 : memref<1x!tpu.dma_semaphore, #tpu.memory_space<semaphore_mem>> -> memref<!tpu.dma_semaphore, #tpu.memory_space<semaphore_mem>>
      tpu.enqueue_dma source(%53 : memref<1x256xf32, #tpu.memory_space<vmem>>) target(%54 : memref<1x256xf32, #tpu.memory_space<any>>) target_semaphore(%56 : memref<!tpu.dma_semaphore, #tpu.memory_space<semaphore_mem>>)
      %c8 = arith.constant 8 : index
      %57 = memref.load %arg1[%c8] : memref<10xi32, #tpu.memory_space<smem>>
      %c8_i32 = arith.constant 8 : i32
      %c8_i32_42 = arith.constant 8 : i32
      %c0_i32_43 = arith.constant 0 : i32
      %58 = tpu.memref_slice %arg7[%c8_i32_42, %c0_i32_43] : memref<10x256xf32, #tpu.memory_space<vmem>> -> memref<1x256xf32, #tpu.memory_space<vmem>>
      %c0_i32_44 = arith.constant 0 : i32
      %59 = tpu.memref_slice %arg6[%57, %c0_i32_44] : memref<32x256xf32, #tpu.memory_space<any>> -> memref<1x256xf32, #tpu.memory_space<any>>
      %60 = tpu.memref_slice %arg8[%c8_i32] : memref<10x!tpu.dma_semaphore, #tpu.memory_space<semaphore_mem>> -> memref<1x!tpu.dma_semaphore, #tpu.memory_space<semaphore_mem>>
      %61 = tpu.memref_squeeze %60 : memref<1x!tpu.dma_semaphore, #tpu.memory_space<semaphore_mem>> -> memref<!tpu.dma_semaphore, #tpu.memory_space<semaphore_mem>>
      tpu.enqueue_dma source(%58 : memref<1x256xf32, #tpu.memory_space<vmem>>) target(%59 : memref<1x256xf32, #tpu.memory_space<any>>) target_semaphore(%61 : memref<!tpu.dma_semaphore, #tpu.memory_space<semaphore_mem>>)
      %c9 = arith.constant 9 : index
      %62 = memref.load %arg1[%c9] : memref<10xi32, #tpu.memory_space<smem>>
      %c9_i32 = arith.constant 9 : i32
      %c9_i32_45 = arith.constant 9 : i32
      %c0_i32_46 = arith.constant 0 : i32
      %63 = tpu.memref_slice %arg7[%c9_i32_45, %c0_i32_46] : memref<10x256xf32, #tpu.memory_space<vmem>> -> memref<1x256xf32, #tpu.memory_space<vmem>>
      %c0_i32_47 = arith.constant 0 : i32
      %64 = tpu.memref_slice %arg6[%62, %c0_i32_47] : memref<32x256xf32, #tpu.memory_space<any>> -> memref<1x256xf32, #tpu.memory_space<any>>
      %65 = tpu.memref_slice %arg8[%c9_i32] : memref<10x!tpu.dma_semaphore, #tpu.memory_space<semaphore_mem>> -> memref<1x!tpu.dma_semaphore, #tpu.memory_space<semaphore_mem>>
      %66 = tpu.memref_squeeze %65 : memref<1x!tpu.dma_semaphore, #tpu.memory_space<semaphore_mem>> -> memref<!tpu.dma_semaphore, #tpu.memory_space<semaphore_mem>>
      tpu.enqueue_dma source(%63 : memref<1x256xf32, #tpu.memory_space<vmem>>) target(%64 : memref<1x256xf32, #tpu.memory_space<any>>) target_semaphore(%66 : memref<!tpu.dma_semaphore, #tpu.memory_space<semaphore_mem>>)
      %c0_i32_48 = arith.constant 0 : i32
      %c0_i32_49 = arith.constant 0 : i32
      %c0_i32_50 = arith.constant 0 : i32
      %67 = tpu.memref_slice %arg7[%c0_i32_49, %c0_i32_50] : memref<10x256xf32, #tpu.memory_space<vmem>> -> memref<1x256xf32, #tpu.memory_space<vmem>>
      %c0_i32_51 = arith.constant 0 : i32
      %68 = tpu.memref_slice %arg6[%17, %c0_i32_51] : memref<32x256xf32, #tpu.memory_space<any>> -> memref<1x256xf32, #tpu.memory_space<any>>
      %69 = tpu.memref_slice %arg8[%c0_i32_48] : memref<10x!tpu.dma_semaphore, #tpu.memory_space<semaphore_mem>> -> memref<1x!tpu.dma_semaphore, #tpu.memory_space<semaphore_mem>>
      %70 = tpu.memref_squeeze %69 : memref<1x!tpu.dma_semaphore, #tpu.memory_space<semaphore_mem>> -> memref<!tpu.dma_semaphore, #tpu.memory_space<semaphore_mem>>
      tpu.wait_dma2 semaphore(%70 : memref<!tpu.dma_semaphore, #tpu.memory_space<semaphore_mem>>) src(%67 : memref<1x256xf32, #tpu.memory_space<vmem>>) dst(%68 : memref<1x256xf32, #tpu.memory_space<any>>)
      %c1_i32_52 = arith.constant 1 : i32
      %c1_i32_53 = arith.constant 1 : i32
      %c0_i32_54 = arith.constant 0 : i32
      %71 = tpu.memref_slice %arg7[%c1_i32_53, %c0_i32_54] : memref<10x256xf32, #tpu.memory_space<vmem>> -> memref<1x256xf32, #tpu.memory_space<vmem>>
      %c0_i32_55 = arith.constant 0 : i32
      %72 = tpu.memref_slice %arg6[%22, %c0_i32_55] : memref<32x256xf32, #tpu.memory_space<any>> -> memref<1x256xf32, #tpu.memory_space<any>>
      %73 = tpu.memref_slice %arg8[%c1_i32_52] : memref<10x!tpu.dma_semaphore, #tpu.memory_space<semaphore_mem>> -> memref<1x!tpu.dma_semaphore, #tpu.memory_space<semaphore_mem>>
      %74 = tpu.memref_squeeze %73 : memref<1x!tpu.dma_semaphore, #tpu.memory_space<semaphore_mem>> -> memref<!tpu.dma_semaphore, #tpu.memory_space<semaphore_mem>>
      tpu.wait_dma2 semaphore(%74 : memref<!tpu.dma_semaphore, #tpu.memory_space<semaphore_mem>>) src(%71 : memref<1x256xf32, #tpu.memory_space<vmem>>) dst(%72 : memref<1x256xf32, #tpu.memory_space<any>>)
      %c2_i32_56 = arith.constant 2 : i32
      %c2_i32_57 = arith.constant 2 : i32
      %c0_i32_58 = arith.constant 0 : i32
      %75 = tpu.memref_slice %arg7[%c2_i32_57, %c0_i32_58] : memref<10x256xf32, #tpu.memory_space<vmem>> -> memref<1x256xf32, #tpu.memory_space<vmem>>
      %c0_i32_59 = arith.constant 0 : i32
      %76 = tpu.memref_slice %arg6[%27, %c0_i32_59] : memref<32x256xf32, #tpu.memory_space<any>> -> memref<1x256xf32, #tpu.memory_space<any>>
      %77 = tpu.memref_slice %arg8[%c2_i32_56] : memref<10x!tpu.dma_semaphore, #tpu.memory_space<semaphore_mem>> -> memref<1x!tpu.dma_semaphore, #tpu.memory_space<semaphore_mem>>
      %78 = tpu.memref_squeeze %77 : memref<1x!tpu.dma_semaphore, #tpu.memory_space<semaphore_mem>> -> memref<!tpu.dma_semaphore, #tpu.memory_space<semaphore_mem>>
      tpu.wait_dma2 semaphore(%78 : memref<!tpu.dma_semaphore, #tpu.memory_space<semaphore_mem>>) src(%75 : memref<1x256xf32, #tpu.memory_space<vmem>>) dst(%76 : memref<1x256xf32, #tpu.memory_space<any>>)
      %c3_i32_60 = arith.constant 3 : i32
      %c3_i32_61 = arith.constant 3 : i32
      %c0_i32_62 = arith.constant 0 : i32
      %79 = tpu.memref_slice %arg7[%c3_i32_61, %c0_i32_62] : memref<10x256xf32, #tpu.memory_space<vmem>> -> memref<1x256xf32, #tpu.memory_space<vmem>>
      %c0_i32_63 = arith.constant 0 : i32
      %80 = tpu.memref_slice %arg6[%32, %c0_i32_63] : memref<32x256xf32, #tpu.memory_space<any>> -> memref<1x256xf32, #tpu.memory_space<any>>
      %81 = tpu.memref_slice %arg8[%c3_i32_60] : memref<10x!tpu.dma_semaphore, #tpu.memory_space<semaphore_mem>> -> memref<1x!tpu.dma_semaphore, #tpu.memory_space<semaphore_mem>>
      %82 = tpu.memref_squeeze %81 : memref<1x!tpu.dma_semaphore, #tpu.memory_space<semaphore_mem>> -> memref<!tpu.dma_semaphore, #tpu.memory_space<semaphore_mem>>
      tpu.wait_dma2 semaphore(%82 : memref<!tpu.dma_semaphore, #tpu.memory_space<semaphore_mem>>) src(%79 : memref<1x256xf32, #tpu.memory_space<vmem>>) dst(%80 : memref<1x256xf32, #tpu.memory_space<any>>)
      %c4_i32_64 = arith.constant 4 : i32
      %c4_i32_65 = arith.constant 4 : i32
      %c0_i32_66 = arith.constant 0 : i32
      %83 = tpu.memref_slice %arg7[%c4_i32_65, %c0_i32_66] : memref<10x256xf32, #tpu.memory_space<vmem>> -> memref<1x256xf32, #tpu.memory_space<vmem>>
      %c0_i32_67 = arith.constant 0 : i32
      %84 = tpu.memref_slice %arg6[%37, %c0_i32_67] : memref<32x256xf32, #tpu.memory_space<any>> -> memref<1x256xf32, #tpu.memory_space<any>>
      %85 = tpu.memref_slice %arg8[%c4_i32_64] : memref<10x!tpu.dma_semaphore, #tpu.memory_space<semaphore_mem>> -> memref<1x!tpu.dma_semaphore, #tpu.memory_space<semaphore_mem>>
      %86 = tpu.memref_squeeze %85 : memref<1x!tpu.dma_semaphore, #tpu.memory_space<semaphore_mem>> -> memref<!tpu.dma_semaphore, #tpu.memory_space<semaphore_mem>>
      tpu.wait_dma2 semaphore(%86 : memref<!tpu.dma_semaphore, #tpu.memory_space<semaphore_mem>>) src(%83 : memref<1x256xf32, #tpu.memory_space<vmem>>) dst(%84 : memref<1x256xf32, #tpu.memory_space<any>>)
      %c5_i32_68 = arith.constant 5 : i32
      %c5_i32_69 = arith.constant 5 : i32
      %c0_i32_70 = arith.constant 0 : i32
      %87 = tpu.memref_slice %arg7[%c5_i32_69, %c0_i32_70] : memref<10x256xf32, #tpu.memory_space<vmem>> -> memref<1x256xf32, #tpu.memory_space<vmem>>
      %c0_i32_71 = arith.constant 0 : i32
      %88 = tpu.memref_slice %arg6[%42, %c0_i32_71] : memref<32x256xf32, #tpu.memory_space<any>> -> memref<1x256xf32, #tpu.memory_space<any>>
      %89 = tpu.memref_slice %arg8[%c5_i32_68] : memref<10x!tpu.dma_semaphore, #tpu.memory_space<semaphore_mem>> -> memref<1x!tpu.dma_semaphore, #tpu.memory_space<semaphore_mem>>
      %90 = tpu.memref_squeeze %89 : memref<1x!tpu.dma_semaphore, #tpu.memory_space<semaphore_mem>> -> memref<!tpu.dma_semaphore, #tpu.memory_space<semaphore_mem>>
      tpu.wait_dma2 semaphore(%90 : memref<!tpu.dma_semaphore, #tpu.memory_space<semaphore_mem>>) src(%87 : memref<1x256xf32, #tpu.memory_space<vmem>>) dst(%88 : memref<1x256xf32, #tpu.memory_space<any>>)
      %c6_i32_72 = arith.constant 6 : i32
      %c6_i32_73 = arith.constant 6 : i32
      %c0_i32_74 = arith.constant 0 : i32
      %91 = tpu.memref_slice %arg7[%c6_i32_73, %c0_i32_74] : memref<10x256xf32, #tpu.memory_space<vmem>> -> memref<1x256xf32, #tpu.memory_space<vmem>>
      %c0_i32_75 = arith.constant 0 : i32
      %92 = tpu.memref_slice %arg6[%47, %c0_i32_75] : memref<32x256xf32, #tpu.memory_space<any>> -> memref<1x256xf32, #tpu.memory_space<any>>
      %93 = tpu.memref_slice %arg8[%c6_i32_72] : memref<10x!tpu.dma_semaphore, #tpu.memory_space<semaphore_mem>> -> memref<1x!tpu.dma_semaphore, #tpu.memory_space<semaphore_mem>>
      %94 = tpu.memref_squeeze %93 : memref<1x!tpu.dma_semaphore, #tpu.memory_space<semaphore_mem>> -> memref<!tpu.dma_semaphore, #tpu.memory_space<semaphore_mem>>
      tpu.wait_dma2 semaphore(%94 : memref<!tpu.dma_semaphore, #tpu.memory_space<semaphore_mem>>) src(%91 : memref<1x256xf32, #tpu.memory_space<vmem>>) dst(%92 : memref<1x256xf32, #tpu.memory_space<any>>)
      %c7_i32_76 = arith.constant 7 : i32
      %c7_i32_77 = arith.constant 7 : i32
      %c0_i32_78 = arith.constant 0 : i32
      %95 = tpu.memref_slice %arg7[%c7_i32_77, %c0_i32_78] : memref<10x256xf32, #tpu.memory_space<vmem>> -> memref<1x256xf32, #tpu.memory_space<vmem>>
      %c0_i32_79 = arith.constant 0 : i32
      %96 = tpu.memref_slice %arg6[%52, %c0_i32_79] : memref<32x256xf32, #tpu.memory_space<any>> -> memref<1x256xf32, #tpu.memory_space<any>>
      %97 = tpu.memref_slice %arg8[%c7_i32_76] : memref<10x!tpu.dma_semaphore, #tpu.memory_space<semaphore_mem>> -> memref<1x!tpu.dma_semaphore, #tpu.memory_space<semaphore_mem>>
      %98 = tpu.memref_squeeze %97 : memref<1x!tpu.dma_semaphore, #tpu.memory_space<semaphore_mem>> -> memref<!tpu.dma_semaphore, #tpu.memory_space<semaphore_mem>>
      tpu.wait_dma2 semaphore(%98 : memref<!tpu.dma_semaphore, #tpu.memory_space<semaphore_mem>>) src(%95 : memref<1x256xf32, #tpu.memory_space<vmem>>) dst(%96 : memref<1x256xf32, #tpu.memory_space<any>>)
      %c8_i32_80 = arith.constant 8 : i32
      %c8_i32_81 = arith.constant 8 : i32
      %c0_i32_82 = arith.constant 0 : i32
      %99 = tpu.memref_slice %arg7[%c8_i32_81, %c0_i32_82] : memref<10x256xf32, #tpu.memory_space<vmem>> -> memref<1x256xf32, #tpu.memory_space<vmem>>
      %c0_i32_83 = arith.constant 0 : i32
      %100 = tpu.memref_slice %arg6[%57, %c0_i32_83] : memref<32x256xf32, #tpu.memory_space<any>> -> memref<1x256xf32, #tpu.memory_space<any>>
      %101 = tpu.memref_slice %arg8[%c8_i32_80] : memref<10x!tpu.dma_semaphore, #tpu.memory_space<semaphore_mem>> -> memref<1x!tpu.dma_semaphore, #tpu.memory_space<semaphore_mem>>
      %102 = tpu.memref_squeeze %101 : memref<1x!tpu.dma_semaphore, #tpu.memory_space<semaphore_mem>> -> memref<!tpu.dma_semaphore, #tpu.memory_space<semaphore_mem>>
      tpu.wait_dma2 semaphore(%102 : memref<!tpu.dma_semaphore, #tpu.memory_space<semaphore_mem>>) src(%99 : memref<1x256xf32, #tpu.memory_space<vmem>>) dst(%100 : memref<1x256xf32, #tpu.memory_space<any>>)
      %c9_i32_84 = arith.constant 9 : i32
      %c9_i32_85 = arith.constant 9 : i32
      %c0_i32_86 = arith.constant 0 : i32
      %103 = tpu.memref_slice %arg7[%c9_i32_85, %c0_i32_86] : memref<10x256xf32, #tpu.memory_space<vmem>> -> memref<1x256xf32, #tpu.memory_space<vmem>>
      %c0_i32_87 = arith.constant 0 : i32
      %104 = tpu.memref_slice %arg6[%62, %c0_i32_87] : memref<32x256xf32, #tpu.memory_space<any>> -> memref<1x256xf32, #tpu.memory_space<any>>
      %105 = tpu.memref_slice %arg8[%c9_i32_84] : memref<10x!tpu.dma_semaphore, #tpu.memory_space<semaphore_mem>> -> memref<1x!tpu.dma_semaphore, #tpu.memory_space<semaphore_mem>>
      %106 = tpu.memref_squeeze %105 : memref<1x!tpu.dma_semaphore, #tpu.memory_space<semaphore_mem>> -> memref<!tpu.dma_semaphore, #tpu.memory_space<semaphore_mem>>
      tpu.wait_dma2 semaphore(%106 : memref<!tpu.dma_semaphore, #tpu.memory_space<semaphore_mem>>) src(%103 : memref<1x256xf32, #tpu.memory_space<vmem>>) dst(%104 : memref<1x256xf32, #tpu.memory_space<any>>)
    } else {
    }
    return
  }
  func.func @transform_0(%arg0: i32, %arg1: memref<10xi32, #tpu.memory_space<smem>>) -> (i32, i32) {
    %c0_i32 = arith.constant 0 : i32
    %c0_i32_0 = arith.constant 0 : i32
    return %c0_i32, %arg0 : i32, i32
  }
  func.func @transform_1(%arg0: i32, %arg1: memref<10xi32, #tpu.memory_space<smem>>) -> (i32, i32) {
    %c0_i32 = arith.constant 0 : i32
    %c0_i32_0 = arith.constant 0 : i32
    return %arg0, %c0_i32 : i32, i32
  }
  func.func @transform_2(%arg0: i32, %arg1: memref<10xi32, #tpu.memory_space<smem>>) -> (i32, i32) {
    %c0_i32 = arith.constant 0 : i32
    %c0_i32_0 = arith.constant 0 : i32
    %c0_i32_1 = arith.constant 0 : i32
    return %c0_i32, %c0_i32_0 : i32, i32
  }
}

</mosaic_0001>

<bundles_post_ra>
// kernel: phi2_meta_forward.1
= control target key start
LH: loop header
LB: loop body
LE: loop exit
PB: predicated region body
PF: predicated region fallthrough
CT: control target
= control target key end

     0   :  { %s1438_s21 = smov [#allocation5]   ;;  %s1623_s0 = inlined_call_operand.vmem [shape: s32[10], index: 0, kind: input, shape index: {}]   ;;  %s1624_s1 = inlined_call_operand.vmem [shape: bf16[10,512], index: 1, kind: input, shape index: {}]   ;;  %s1625_s2 = inlined_call_operand.vmem [shape: bf16[512,256], index: 2, kind: input, shape index: {}]   ;;  %s1626_s3 = inlined_call_operand.vmem [shape: f32[1,256], index: 3, kind: input, shape index: {}]   ;;  %s1627_s4 = inlined_call_operand.vmem [shape: f32[32,256], index: 4, kind: input, shape index: {}, may-alias: {4,5}]   ;;  %s1628_s5 = inlined_call_operand.vmem [shape: f32[32,256], index: 5, kind: output, shape index: {}, may-alias: {4,5}]  }
   0x1   :  { %s11_s20 = sshll.u32 %s1623_s0, 4  ;;  %s12_s20 = int_to_ptr.vmem [resolvable:$true] %s11_s20 }
   0x2   :  { %14 = dma.vmem_to_smem %s12_s20, 16, %s1438_s21, [#allocation4] }
   0x3   :  { %1404 = dma.done.wait [#allocation4], 16 }
   0x4   :  { %1405 = vsyncadd [#allocation4], 4294967280 }
   0x5   :  { %17 = sfence }
   0x6   :  { %s1473_s22 = smov 0   ;;  %s1475_s23 = smov 0  }
   0x7   :  { %s1477_s24 = smov 0  }
   0x8 LB: > { %s1486_s0 = sadd.s32 4294967295, %s1436_s24   ;;  %s1488_s4 = sadd.s32 1, %s1436_s24   ;;  %s1436_s24 = sphi %s1477_s24, %s1631_s24   ;;  %s1432_s23 = sphi %s1475_s23, %s1630_s23   ;;  %s1428_s22 = sphi %s1473_s22, %s1629_s22  }
   0x9   : > { %s26_s25 = ssub.s32 %s1436_s24, %s1488_s4  ;;  %s29_s26 = sadd.s32 1, %s1432_s23 }
   0xa   : > { %p27_p0 = scmp.eq.s32.totalorder %s26_s25, 0  ;;  %p35_p1 = scmp.ne.s32.totalorder %s1432_s23, %s1428_s22 }
   0xb   : > { %p36_p2 = scmp.eq.s32.totalorder %s1436_s24, 0  ;;  %p1141_p4 = scmp.ge.s32.totalorder %s1436_s24, 2 }
   0xc   : > { %s1495_s27 = scalar_select %p27_p0, %s1432_s23, %s29_s26  }
   0xd   : > { %p37_p3 = por %p36_p2, %p35_p1  ;;  %89 = sbr.rel (%p1141_p4) target bundleno = 24 (0x18), region = 20 }
  0x12   : > { %92 = sbr.rel (!%p37_p3) target bundleno = 24 (0x18), region = 24  ;;  %s94_s28 = sand.u32 (%p37_p3), 1, %s1432_s23  }
  0x13   : > { %s1318_s29 = sshll.u32 (%p37_p3), %s1436_s24, 3  ;;  %s1142_s30 = sshll.u32 (%p37_p3), %s94_s28, 4 }
  0x14   : > { %s99_s8 = scalar_lea.vmem (%p37_p3), %s1624_s1, %s1318_s29  ;;  %s96_s9 = scalar_lea.vmem (%p37_p3), [#allocation6], %s1142_s30 }
  0x15   : > { %v130_v0 = vld [vmem:[%s99_s8] sm:$0xff] (%p37_p3)  ;;  %v132_v1 = vld [vmem:[%s99_s8 + $0x10] sm:$0xff] (%p37_p3) }
  0x16   : > { %131 = vst [vmem:[%s96_s9] sm:$0xff] (%p37_p3), %v130_v0 }
  0x17   : > { %133 = vst [vmem:[%s96_s9 + $0x8] sm:$0xff] %v132_v1 }
  0x18 PF: > { %p1146_p5 = scmp.lt.s32.totalorder %s1436_s24, 1 }
  0x19   : > { %s153_s10 = sand.u32 (!%p1146_p5), 1, %s1428_s22   ;;  %s1148_s11 = sshll.u32 (!%p1146_p5), %s1486_s0, 5 }
  0x1a   : > { %150 = sbr.rel (%p1146_p5) target bundleno = 367 (0x16f), region = 66  ;;  %s1147_s12 = sshll.u32 (!%p1146_p5), %s153_s10, 4 }
  0x1b   : > { %p177_p6 = scmp.lt.s32.totalorder (!%p1146_p5), %s1148_s11, 63  ;;  %s1508_s17 = scalar_lea.vmem (!%p1146_p5), [#allocation6], %s1147_s12 }
  0x1c   : > { %p1151_p7 = scmp.ne.s32.totalorder (!%p1146_p5), %s1486_s0, 0 }
  0x1f   : > { %s1633_s11 = smov (!%p177_p6, %s1148_s11), 63  ;;  %186 = sbr.rel (%p1151_p7) target bundleno = 41 (0x29), region = 74 }
  0x20   : > { %s1319_s13 = sshll.u32 %s1633_s11, 3 }
  0x21   : > { %s1506_s16 = scalar_lea.vmem %s1625_s2, %s1319_s13 }
  0x24   : > { %v1439_v2 = vmov 0.0  }
  0x25   : > { %187 = vst [vmem:[#allocation2] sm:$0xff] %v1439_v2 }
  0x26   : > { %188 = vst [vmem:[#allocation2 + $0x8] sm:$0xff] %v1439_v2 }
  0x27   : > { %189 = vst [vmem:[#allocation2 + $0x10] sm:$0x3] %v1439_v2 }
  0x28   : > { %190 = vst [vmem:[#allocation2 + $0x18] sm:$0x3] %v1439_v2 }
  0x29 PF: > { %v1218_v3 = vld [vmem:[%s1506_s16 + $0x70] sm:$0xf]  ;;  %v1337_v4 = vld [vmem:[%s1506_s16 + $0x74] sm:$0xf0]  ;;  %v1336_v8 = vld [vmem:[%s1506_s16 + $0x74] sm:$0xf] }
  0x2a   : > { %v1282_v5 = vld [vmem:[%s1506_s16 + $0xf0] sm:$0xf]  ;;  %v1219_v6 = vor.u32 %v1337_v4, %v1218_v3  ;;  %v1353_v7 = vld [vmem:[%s1506_s16 + $0xf4] sm:$0xf0]  ;;  %v1220_v9 = vld [vmem:[%s1506_s16 + $0x78] sm:$0xf0] }
  0x2b   : > { %v1283_v10 = vor.u32 %v1353_v7, %v1282_v5  ;;  %v1223_v11 = vor.u32 %v1336_v8, %v1220_v9  ;;  %v1352_v12 = vld [vmem:[%s1506_s16 + $0xf4] sm:$0xf]  ;;  %v1284_v13 = vld [vmem:[%s1506_s16 + $0xf8] sm:$0xf0]  ;;  %v1210_v14 = vld [vmem:[%s1506_s16 + $0x60] sm:$0xf] }
  0x2c   : > { %399 = vmatpush.bf16.msra.mxu0 %v1219_v6  ;;  %v1287_v15 = vor.u32 %v1352_v12, %v1284_v13  ;;  %v1335_v16 = vld [vmem:[%s1506_s16 + $0x64] sm:$0xf0]  ;;  %v1274_v17 = vld [vmem:[%s1506_s16 + $0xe0] sm:$0xf]  ;;  %v1334_v21 = vld [vmem:[%s1506_s16 + $0x64] sm:$0xf] }
  0x2d   : > { %v1351_v18 = vld [vmem:[%s1506_s16 + $0xe4] sm:$0xf0]  ;;  %413 = vmatpush.bf16.msra.mxu1 %v1283_v10  ;;  %427 = vmatpush.bf16.msra.mxu2 %v1223_v11  ;;  %v1211_v19 = vor.u32 %v1335_v16, %v1210_v14  ;;  %v1212_v22 = vld [vmem:[%s1506_s16 + $0x68] sm:$0xf0]  ;;  %v1350_v23 = vld [vmem:[%s1506_s16 + $0xe4] sm:$0xf] }
  0x2e   : > { %v1275_v20 = vor.u32 %v1351_v18, %v1274_v17  ;;  %441 = vmatpush.bf16.msra.mxu3 %v1287_v15  ;;  %v1215_v24 = vor.u32 %v1334_v21, %v1212_v22  ;;  %v1276_v25 = vld [vmem:[%s1506_s16 + $0xe8] sm:$0xf0]  ;;  %v1202_v26 = vld [vmem:[%s1506_s16 + $0x50] sm:$0xf]  ;;  %v1333_v27 = vld [vmem:[%s1506_s16 + $0x54] sm:$0xf0] }
  0x2f   : > { %v1279_v28 = vor.u32 %v1350_v23, %v1276_v25  ;;  %v1266_v29 = vld [vmem:[%s1506_s16 + $0xd0] sm:$0xf]  ;;  %v1349_v30 = vld [vmem:[%s1506_s16 + $0xd4] sm:$0xf0]  ;;  %v1332_v31 = vld [vmem:[%s1506_s16 + $0x54] sm:$0xf]  ;;  %v1203_v32 = vor.u32 %v1333_v27, %v1202_v26 }
  0x30   : > { %400 = vmatpush.bf16.msra.mxu0 %v1211_v19  ;;  %v1204_v33 = vld [vmem:[%s1506_s16 + $0x58] sm:$0xf0]  ;;  %v1348_v34 = vld [vmem:[%s1506_s16 + $0xd4] sm:$0xf]  ;;  %v1267_v36 = vor.u32 %v1349_v30, %v1266_v29  ;;  %v1194_v38 = vld [vmem:[%s1506_s16 + $0x40] sm:$0xf] }
  0x31   : > { %v1268_v35 = vld [vmem:[%s1506_s16 + $0xd8] sm:$0xf0]  ;;  %414 = vmatpush.bf16.msra.mxu1 %v1275_v20  ;;  %428 = vmatpush.bf16.msra.mxu2 %v1215_v24  ;;  %v1207_v37 = vor.u32 %v1332_v31, %v1204_v33  ;;  %v1331_v39 = vld [vmem:[%s1506_s16 + $0x44] sm:$0xf0]  ;;  %v1258_v40 = vld [vmem:[%s1506_s16 + $0xc0] sm:$0xf] }
  0x32   : > { %442 = vmatpush.bf16.msra.mxu3 %v1279_v28  ;;  %v1271_v41 = vor.u32 %v1348_v34, %v1268_v35  ;;  %v1347_v42 = vld [vmem:[%s1506_s16 + $0xc4] sm:$0xf0]  ;;  %v1330_v43 = vld [vmem:[%s1506_s16 + $0x44] sm:$0xf]  ;;  %v1196_v44 = vld [vmem:[%s1506_s16 + $0x48] sm:$0xf0]  ;;  %v1195_v47 = vor.u32 %v1331_v39, %v1194_v38 }
  0x33   : > { %v1346_v45 = vld [vmem:[%s1506_s16 + $0xc4] sm:$0xf]  ;;  %v1260_v46 = vld [vmem:[%s1506_s16 + $0xc8] sm:$0xf0]  ;;  %v1259_v48 = vor.u32 %v1347_v42, %v1258_v40  ;;  %v1199_v49 = vor.u32 %v1330_v43, %v1196_v44  ;;  %v1186_v50 = vld [vmem:[%s1506_s16 + $0x30] sm:$0xf] }
  0x34   : > { %401 = vmatpush.bf16.msra.mxu0 %v1203_v32  ;;  %v1329_v51 = vld [vmem:[%s1506_s16 + $0x34] sm:$0xf0]  ;;  %v1250_v52 = vld [vmem:[%s1506_s16 + $0xb0] sm:$0xf]  ;;  %v1263_v53 = vor.u32 %v1346_v45, %v1260_v46  ;;  %v1328_v55 = vld [vmem:[%s1506_s16 + $0x34] sm:$0xf] }
  0x35   : > { %415 = vmatpush.bf16.msra.mxu1 %v1267_v36  ;;  %429 = vmatpush.bf16.msra.mxu2 %v1207_v37  ;;  %v1345_v54 = vld [vmem:[%s1506_s16 + $0xb4] sm:$0xf0]  ;;  %v1188_v56 = vld [vmem:[%s1506_s16 + $0x38] sm:$0xf0]  ;;  %v1344_v57 = vld [vmem:[%s1506_s16 + $0xb4] sm:$0xf]  ;;  %v1187_v59 = vor.u32 %v1329_v51, %v1186_v50 }
  0x36   : > { %443 = vmatpush.bf16.msra.mxu3 %v1271_v41  ;;  %v1252_v58 = vld [vmem:[%s1506_s16 + $0xb8] sm:$0xf0]  ;;  %v1251_v60 = vor.u32 %v1345_v54, %v1250_v52  ;;  %v1191_v61 = vor.u32 %v1328_v55, %v1188_v56  ;;  %v1178_v62 = vld [vmem:[%s1506_s16 + $0x20] sm:$0xf]  ;;  %v1327_v63 = vld [vmem:[%s1506_s16 + $0x24] sm:$0xf0] }
  0x37   : > { %v1242_v0 = vld [vmem:[%s1506_s16 + $0xa0] sm:$0xf]  ;;  %v1255_v1 = vor.u32 %v1344_v57, %v1252_v58  ;;  %v1343_v2 = vld [vmem:[%s1506_s16 + $0xa4] sm:$0xf0]  ;;  %v1326_v3 = vld [vmem:[%s1506_s16 + $0x24] sm:$0xf]  ;;  %v1179_v7 = vor.u32 %v1327_v63, %v1178_v62 }
  0x38   : > { %402 = vmatpush.bf16.msra.mxu0 %v1195_v47  ;;  %v1180_v4 = vld [vmem:[%s1506_s16 + $0x28] sm:$0xf0]  ;;  %v1342_v5 = vld [vmem:[%s1506_s16 + $0xa4] sm:$0xf]  ;;  %v1243_v8 = vor.u32 %v1343_v2, %v1242_v0  ;;  %v1170_v10 = vld [vmem:[%s1506_s16 + $0x10] sm:$0xf] }
  0x39   : > { %416 = vmatpush.bf16.msra.mxu1 %v1259_v48  ;;  %430 = vmatpush.bf16.msra.mxu2 %v1199_v49  ;;  %v1244_v6 = vld [vmem:[%s1506_s16 + $0xa8] sm:$0xf0]  ;;  %v1183_v9 = vor.u32 %v1326_v3, %v1180_v4  ;;  %v1325_v11 = vld [vmem:[%s1506_s16 + $0x14] sm:$0xf0]  ;;  %v1234_v12 = vld [vmem:[%s1506_s16 + $0x90] sm:$0xf] }
  0x3a   : > { %444 = vmatpush.bf16.msra.mxu3 %v1263_v53  ;;  %v1247_v13 = vor.u32 %v1342_v5, %v1244_v6  ;;  %v1341_v14 = vld [vmem:[%s1506_s16 + $0x94] sm:$0xf0]  ;;  %v1324_v15 = vld [vmem:[%s1506_s16 + $0x14] sm:$0xf]  ;;  %v1172_v16 = vld [vmem:[%s1506_s16 + $0x18] sm:$0xf0]  ;;  %v1171_v19 = vor.u32 %v1325_v11, %v1170_v10 }
  0x3b   : > { %v1340_v17 = vld [vmem:[%s1506_s16 + $0x94] sm:$0xf]  ;;  %v1236_v18 = vld [vmem:[%s1506_s16 + $0x98] sm:$0xf0]  ;;  %v1235_v20 = vor.u32 %v1341_v14, %v1234_v12  ;;  %v1175_v21 = vor.u32 %v1324_v15, %v1172_v16  ;;  %v1162_v22 = vld [vmem:[%s1506_s16] sm:$0xf] }
  0x3c   : > { %403 = vmatpush.bf16.msra.mxu0 %v1187_v59  ;;  %v1323_v23 = vld [vmem:[%s1506_s16 + $0x4] sm:$0xf0]  ;;  %v1226_v24 = vld [vmem:[%s1506_s16 + $0x80] sm:$0xf]  ;;  %v1239_v25 = vor.u32 %v1340_v17, %v1236_v18  ;;  %v1322_v27 = vld [vmem:[%s1506_s16 + $0x4] sm:$0xf] }
  0x3d   : > { %417 = vmatpush.bf16.msra.mxu1 %v1251_v60  ;;  %431 = vmatpush.bf16.msra.mxu2 %v1191_v61  ;;  %v1339_v26 = vld [vmem:[%s1506_s16 + $0x84] sm:$0xf0]  ;;  %v1164_v28 = vld [vmem:[%s1506_s16 + $0x8] sm:$0xf0]  ;;  %v1338_v29 = vld [vmem:[%s1506_s16 + $0x84] sm:$0xf]  ;;  %v1163_v31 = vor.u32 %v1323_v23, %v1162_v22 }
  0x3e   : > { %445 = vmatpush.bf16.msra.mxu3 %v1255_v1  ;;  %v1228_v30 = vld [vmem:[%s1506_s16 + $0x88] sm:$0xf0]  ;;  %v1154_v32 = vld [vmem:[%s1508_s17] sm:$0xf]  ;;  %v1321_v33 = vld [vmem:[%s1508_s17 + $0x4] sm:$0x10]  ;;  %v1227_v34 = vor.u32 %v1339_v26, %v1226_v24  ;;  %v1167_v35 = vor.u32 %v1322_v27, %v1164_v28 }
  0x3f   : > { %v1320_v36 = vld [vmem:[%s1508_s17 + $0x4] sm:$0xf]  ;;  %v1156_v37 = vld [vmem:[%s1508_s17 + $0x8] sm:$0x10]  ;;  %v1231_v38 = vor.u32 %v1338_v29, %v1228_v30  ;;  %v1155_v39 = vor.u32 %v1321_v33, %v1154_v32  ;;  %v193_v51 = vld [vmem:[#allocation2 + $0x10] sm:$0x3] }
  0x40   : > { %404 = vmatpush.bf16.msra.mxu0 %v1179_v7  ;;  %v1159_v40 = vor.u32 %v1320_v36, %v1156_v37  ;;  %v191_v42 = vld [vmem:[#allocation2] sm:$0xff]  ;;  %v192_v47 = vld [vmem:[#allocation2 + $0x8] sm:$0xff]  ;;  %v194_v57 = vld [vmem:[#allocation2 + $0x18] sm:$0x3]  ;;  %p1288_p8 = scmp.ne.s32.totalorder %s1486_s0, 1 }
  0x41   : > { %418 = vmatpush.bf16.msra.mxu1 %v1243_v8  ;;  %432 = vmatpush.bf16.msra.mxu2 %v1183_v9  ;;  %s485_s20 = sld [smem:[#allocation5]] (!%p1288_p8) }
  0x42   : > { %446 = vmatpush.bf16.msra.mxu3 %v1247_v13 }
  0x44   : > { %405 = vmatpush.bf16.msra.mxu0 %v1171_v19 }
  0x45   : > { %419 = vmatpush.bf16.msra.mxu1 %v1235_v20  ;;  %433 = vmatpush.bf16.msra.mxu2 %v1175_v21 }
  0x46   : > { %447 = vmatpush.bf16.msra.mxu3 %v1239_v25 }
  0x47   : > { %s486_s21 = sshrl.u32 (!%p1288_p8), %s485_s20, 3  ;;  %s487_s22 = sand.u32 (!%p1288_p8), 7, %s485_s20  }
  0x48   : > { %406 = vmatpush.bf16.msra.mxu0 %v1163_v31  ;;  %s1289_s24 = sshll.u32 (!%p1288_p8), %s486_s21, 4 }
  0x49   : > { %420 = vmatpush.bf16.msra.mxu1 %v1227_v34  ;;  %434 = vmatpush.bf16.msra.mxu2 %v1167_v35  ;;  %s489_s0 = sadd.s32 (!%p1288_p8), %s1289_s24, %s487_s22 }
  0x4a   : > { %448 = vmatpush.bf16.msra.mxu3 %v1231_v38  ;;  %s490_s28 = scalar_lea.vmem (!%p1288_p8), %s1628_s5, %s489_s0 }
  0x4b   : > { %407 = vmatmul.bf16.vlgmr.msra.gmra.mxu0 %v1155_v39 }
  0x4c   : > { %421 = vmatmul.bf16.vlgmr.msra.gmra.mxu1 %v1159_v40  ;;  %435 = vmatmul.bf16.vlgmr.msra.gmra.mxu2 %v1155_v39 }
  0x4d   : > { %449 = vmatmul.bf16.vlgmr.msra.gmra.mxu3 %v1159_v40 }
  0xc8   : > { %v408_v41 = vpop.f32.mrf.mxu0 }
  0xc9   : > { %v422_v43 = vpop.f32.mrf.mxu1 }
  0xca   : > { %v423_v44 = vadd.f32 %v422_v43, %v408_v41 }
  0xcc   : > { %v455_v45 = vadd.f32 %v423_v44, %v191_v42 }
  0xce   : > { %459 = vst [vmem:[#allocation2] sm:$0xff] %v455_v45 }
  0xcf   : > { %v436_v46 = vpop.f32.mrf.mxu2 }
  0xd0   : > { %v450_v48 = vpop.f32.mrf.mxu3  ;;  %v410_v49 = vpop.f32.mrf.mxu0 }
  0xd1   : > { %v451_v50 = vadd.f32 %v450_v48, %v436_v46  ;;  %v424_v52 = vpop.f32.mrf.mxu1 }
  0xd2   : > { %v425_v53 = vadd.f32 %v424_v52, %v410_v49 }
  0xd3   : > { %v456_v54 = vadd.f32 %v451_v50, %v192_v47 }
  0xd4   : > { %v457_v55 = vadd.f32 %v425_v53, %v193_v51 }
  0xd5   : > { %460 = vst [vmem:[#allocation2 + $0x8] sm:$0xff] %v456_v54 }
  0xd6   : > { %461 = vst [vmem:[#allocation2 + $0x10] sm:$0x3] %v457_v55 }
  0xd7   : > { %v438_v56 = vpop.f32.mrf.mxu2 }
  0xd8   : > { %v452_v58 = vpop.f32.mrf.mxu3 }
  0xd9   : > { %v453_v59 = vadd.f32 %v452_v58, %v438_v56  ;;  %466 = sbr.rel (%p1288_p8) target bundleno = 367 (0x16f), region = 78 }
  0xdb   : > { %v458_v60 = vadd.f32 %v453_v59, %v194_v57 }
  0xdd   : > { %462 = vst [vmem:[#allocation2 + $0x18] sm:$0x3] %v458_v60 }
  0xde   : > { %v467_v61 = vld [vmem:[#allocation2] sm:$0xff]  ;;  %v468_v63 = vld [vmem:[#allocation2 + $0x8] sm:$0xff]  ;;  %v469_v2 = vld [vmem:[#allocation2 + $0x10] sm:$0x3] }
  0xdf   : > { %v471_v62 = vld [vmem:[%s1626_s3] sm:$0x3] }
  0xe0   : > { %v473_v0 = vperm.slane %v471_v62, 0  ;;  %v474_v1 = vperm.slane %v471_v62, 1 }
  0xe2   : > { %v477_v4 = vadd.f32 %v473_v0, %v467_v61  ;;  %v478_v5 = vadd.f32 %v474_v1, %v468_v63  ;;  %v479_v6 = vadd.f32 %v473_v0, %v469_v2 }
  0xe4   : > { %v470_v3 = vld [vmem:[#allocation2 + $0x18] sm:$0x3]  ;;  %481 = vst [vmem:[#allocation2] sm:$0xff] %v477_v4 }
  0xe5   : > { %v480_v7 = vadd.f32 %v474_v1, %v470_v3  ;;  %482 = vst [vmem:[#allocation2 + $0x8] sm:$0xff] %v478_v5 }
  0xe6   : > { %483 = vst [vmem:[#allocation2 + $0x10] sm:$0x3] %v479_v6 }
  0xe7   : > { %484 = vst [vmem:[#allocation2 + $0x18] sm:$0x3] %v480_v7 }
  0xeb   : > { %v505_v8 = vld [vmem:[#allocation2] sm:$0x1] }
  0xec   : > { %506 = vst [vmem:[%s490_s28] sm:$0x1] %v505_v8  ;;  %v507_v9 = vld [vmem:[#allocation2 + $0x8] sm:$0x1] }
  0xed   : > { %508 = vst [vmem:[%s490_s28 + $0x8] sm:$0x1] %v507_v9 }
  0xee   : > { %528 = vsyncadd [#allocation3], 32  ;;  %s1290_s29 = sld [smem:[#allocation5 + $0x1]]  ;;  %v551_v10 = vld [vmem:[#allocation2 + $0x1] sm:$0x1] }
  0xef   : > { %v553_v11 = vld [vmem:[#allocation2 + $0x9] sm:$0x1] }
  0xf4   : > { %s531_s30 = sshrl.u32 %s1290_s29, 3  ;;  %s532_s6 = sand.u32 7, %s1290_s29  }
  0xf5   : > { %s1291_s7 = sshll.u32 %s531_s30, 4 }
  0xf6   : > { %s534_s8 = sadd.s32 %s1291_s7, %s532_s6 }
  0xf7   : > { %s535_s11 = scalar_lea.vmem %s1628_s5, %s534_s8 }
  0xf8   : > { %552 = vst [vmem:[%s535_s11] sm:$0x1] %v551_v10 }
  0xf9   : > { %554 = vst [vmem:[%s535_s11 + $0x8] sm:$0x1] %v553_v11 }
  0xfa   : > { %574 = vsyncadd [#allocation3 + $0x1], 32  ;;  %s1292_s12 = sld [smem:[#allocation5 + $0x2]]  ;;  %v597_v12 = vld [vmem:[#allocation2 + $0x2] sm:$0x1] }
  0xfb   : > { %v599_v13 = vld [vmem:[#allocation2 + $0xa] sm:$0x1] }
 0x100   : > { %s577_s13 = sshrl.u32 %s1292_s12, 3  ;;  %s578_s14 = sand.u32 7, %s1292_s12  }
 0x101   : > { %s1293_s15 = sshll.u32 %s577_s13, 4 }
 0x102   : > { %s580_s16 = sadd.s32 %s1293_s15, %s578_s14 }
 0x103   : > { %s581_s19 = scalar_lea.vmem %s1628_s5, %s580_s16 }
 0x104   : > { %598 = vst [vmem:[%s581_s19] sm:$0x1] %v597_v12 }
 0x105   : > { %600 = vst [vmem:[%s581_s19 + $0x8] sm:$0x1] %v599_v13 }
 0x106   : > { %620 = vsyncadd [#allocation3 + $0x2], 32  ;;  %s1294_s20 = sld [smem:[#allocation5 + $0x3]]  ;;  %v643_v14 = vld [vmem:[#allocation2 + $0x3] sm:$0x1] }
 0x107   : > { %v645_v15 = vld [vmem:[#allocation2 + $0xb] sm:$0x1] }
 0x10c   : > { %s623_s21 = sshrl.u32 %s1294_s20, 3  ;;  %s624_s22 = sand.u32 7, %s1294_s20  }
 0x10d   : > { %s1295_s24 = sshll.u32 %s623_s21, 4 }
 0x10e   : > { %s626_s0 = sadd.s32 %s1295_s24, %s624_s22 }
 0x10f   : > { %s627_s28 = scalar_lea.vmem %s1628_s5, %s626_s0 }
 0x110   : > { %644 = vst [vmem:[%s627_s28] sm:$0x1] %v643_v14 }
 0x111   : > { %646 = vst [vmem:[%s627_s28 + $0x8] sm:$0x1] %v645_v15 }
 0x112   : > { %666 = vsyncadd [#allocation3 + $0x3], 32  ;;  %s1296_s29 = sld [smem:[#allocation5 + $0x4]]  ;;  %v689_v16 = vld [vmem:[#allocation2 + $0x4] sm:$0x1] }
 0x113   : > { %v691_v17 = vld [vmem:[#allocation2 + $0xc] sm:$0x1] }
 0x118   : > { %s669_s30 = sshrl.u32 %s1296_s29, 3  ;;  %s670_s6 = sand.u32 7, %s1296_s29  }
 0x119   : > { %s1297_s7 = sshll.u32 %s669_s30, 4 }
 0x11a   : > { %s672_s8 = sadd.s32 %s1297_s7, %s670_s6 }
 0x11b   : > { %s673_s11 = scalar_lea.vmem %s1628_s5, %s672_s8 }
 0x11c   : > { %690 = vst [vmem:[%s673_s11] sm:$0x1] %v689_v16 }
 0x11d   : > { %692 = vst [vmem:[%s673_s11 + $0x8] sm:$0x1] %v691_v17 }
 0x11e   : > { %712 = vsyncadd [#allocation3 + $0x4], 32  ;;  %s1298_s12 = sld [smem:[#allocation5 + $0x5]]  ;;  %v735_v18 = vld [vmem:[#allocation2 + $0x5] sm:$0x1] }
 0x11f   : > { %v737_v19 = vld [vmem:[#allocation2 + $0xd] sm:$0x1] }
 0x124   : > { %s715_s13 = sshrl.u32 %s1298_s12, 3  ;;  %s716_s14 = sand.u32 7, %s1298_s12  }
 0x125   : > { %s1299_s15 = sshll.u32 %s715_s13, 4 }
 0x126   : > { %s718_s16 = sadd.s32 %s1299_s15, %s716_s14 }
 0x127   : > { %s719_s19 = scalar_lea.vmem %s1628_s5, %s718_s16 }
 0x128   : > { %736 = vst [vmem:[%s719_s19] sm:$0x1] %v735_v18 }
 0x129   : > { %738 = vst [vmem:[%s719_s19 + $0x8] sm:$0x1] %v737_v19 }
 0x12a   : > { %758 = vsyncadd [#allocation3 + $0x5], 32  ;;  %s1300_s20 = sld [smem:[#allocation5 + $0x6]]  ;;  %v781_v20 = vld [vmem:[#allocation2 + $0x6] sm:$0x1] }
 0x12b   : > { %v783_v21 = vld [vmem:[#allocation2 + $0xe] sm:$0x1] }
 0x130   : > { %s761_s21 = sshrl.u32 %s1300_s20, 3  ;;  %s762_s22 = sand.u32 7, %s1300_s20  }
 0x131   : > { %s1301_s24 = sshll.u32 %s761_s21, 4 }
 0x132   : > { %s764_s0 = sadd.s32 %s1301_s24, %s762_s22 }
 0x133   : > { %s765_s28 = scalar_lea.vmem %s1628_s5, %s764_s0 }
 0x134   : > { %782 = vst [vmem:[%s765_s28] sm:$0x1] %v781_v20 }
 0x135   : > { %784 = vst [vmem:[%s765_s28 + $0x8] sm:$0x1] %v783_v21 }
 0x136   : > { %804 = vsyncadd [#allocation3 + $0x6], 32  ;;  %s1302_s29 = sld [smem:[#allocation5 + $0x7]]  ;;  %v827_v22 = vld [vmem:[#allocation2 + $0x7] sm:$0x1] }
 0x137   : > { %v829_v23 = vld [vmem:[#allocation2 + $0xf] sm:$0x1] }
 0x13c   : > { %s807_s30 = sshrl.u32 %s1302_s29, 3  ;;  %s808_s6 = sand.u32 7, %s1302_s29  }
 0x13d   : > { %s1303_s7 = sshll.u32 %s807_s30, 4 }
 0x13e   : > { %s810_s8 = sadd.s32 %s1303_s7, %s808_s6 }
 0x13f   : > { %s811_s11 = scalar_lea.vmem %s1628_s5, %s810_s8 }
 0x140   : > { %828 = vst [vmem:[%s811_s11] sm:$0x1] %v827_v22 }
 0x141   : > { %830 = vst [vmem:[%s811_s11 + $0x8] sm:$0x1] %v829_v23 }
 0x142   : > { %850 = vsyncadd [#allocation3 + $0x7], 32  ;;  %s1304_s12 = sld [smem:[#allocation5 + $0x8]]  ;;  %v873_v24 = vld [vmem:[#allocation2 + $0x10] sm:$0x1] }
 0x143   : > { %v875_v25 = vld [vmem:[#allocation2 + $0x18] sm:$0x1] }
 0x148   : > { %s853_s13 = sshrl.u32 %s1304_s12, 3  ;;  %s854_s14 = sand.u32 7, %s1304_s12  }
 0x149   : > { %s1305_s15 = sshll.u32 %s853_s13, 4 }
 0x14a   : > { %s856_s16 = sadd.s32 %s1305_s15, %s854_s14 }
 0x14b   : > { %s857_s19 = scalar_lea.vmem %s1628_s5, %s856_s16 }
 0x14c   : > { %874 = vst [vmem:[%s857_s19] sm:$0x1] %v873_v24 }
 0x14d   : > { %876 = vst [vmem:[%s857_s19 + $0x8] sm:$0x1] %v875_v25 }
 0x14e   : > { %896 = vsyncadd [#allocation3 + $0x8], 32  ;;  %s1306_s20 = sld [smem:[#allocation5 + $0x9]]  ;;  %v919_v26 = vld [vmem:[#allocation2 + $0x11] sm:$0x1] }
 0x14f   : > { %v921_v27 = vld [vmem:[#allocation2 + $0x19] sm:$0x1] }
 0x154   : > { %s899_s21 = sshrl.u32 %s1306_s20, 3  ;;  %s900_s22 = sand.u32 7, %s1306_s20  }
 0x155   : > { %s1307_s24 = sshll.u32 %s899_s21, 4 }
 0x156   : > { %s902_s0 = sadd.s32 %s1307_s24, %s900_s22 }
 0x157   : > { %s903_s28 = scalar_lea.vmem %s1628_s5, %s902_s0 }
 0x158   : > { %920 = vst [vmem:[%s903_s28] sm:$0x1] %v919_v26 }
 0x159   : > { %922 = vst [vmem:[%s903_s28 + $0x8] sm:$0x1] %v921_v27 }
 0x15a   : > { %942 = vsyncadd [#allocation3 + $0x9], 32 }
 0x15b   : > { %1406 = dma.done.wait [#allocation3], 32 }
 0x15c   : > { %1407 = vsyncadd [#allocation3], 4294967264 }
 0x15d   : > { %1408 = dma.done.wait [#allocation3 + $0x1], 32 }
 0x15e   : > { %1409 = vsyncadd [#allocation3 + $0x1], 4294967264 }
 0x15f   : > { %1410 = dma.done.wait [#allocation3 + $0x2], 32 }
 0x160   : > { %1411 = vsyncadd [#allocation3 + $0x2], 4294967264 }
 0x161   : > { %1412 = dma.done.wait [#allocation3 + $0x3], 32 }
 0x162   : > { %1413 = vsyncadd [#allocation3 + $0x3], 4294967264 }
 0x163   : > { %1414 = dma.done.wait [#allocation3 + $0x4], 32 }
 0x164   : > { %1415 = vsyncadd [#allocation3 + $0x4], 4294967264 }
 0x165   : > { %1416 = dma.done.wait [#allocation3 + $0x5], 32 }
 0x166   : > { %1417 = vsyncadd [#allocation3 + $0x5], 4294967264 }
 0x167   : > { %1418 = dma.done.wait [#allocation3 + $0x6], 32 }
 0x168   : > { %1419 = vsyncadd [#allocation3 + $0x6], 4294967264 }
 0x169   : > { %1420 = dma.done.wait [#allocation3 + $0x7], 32 }
 0x16a   : > { %1421 = vsyncadd [#allocation3 + $0x7], 4294967264 }
 0x16b   : > { %1422 = dma.done.wait [#allocation3 + $0x8], 32 }
 0x16c   : > { %1423 = vsyncadd [#allocation3 + $0x8], 4294967264 }
 0x16d   : > { %1424 = dma.done.wait [#allocation3 + $0x9], 32 }
 0x16e   : > { %1425 = vsyncadd [#allocation3 + $0x9], 4294967264 }
 0x16f PF: > { %p20_p9 = scmp.ge.s32.totalorder %s1488_s4, 3   ;;  %s1629_s22 = smov %s1432_s23 }
 0x170   : > { %s1630_s23 = smov %s1495_s27  ;;  %s1631_s24 = smov %s1488_s4 }
 0x171   :  { %22 = sbr.rel (!%p20_p9) target bundleno = 8 (0x8), region = 477 }
 0x176   :  { %964 = vsyncmov [#allocation3] }
 0x179   :  { %s965_s29 = vpop.sfrf %964 }
 0x17a   :  { %p1308_p10 = scmp.ne.s32.totalorder %s965_s29, 0 }
 0x17c   :  { %969 = shalt.err (%p1308_p10)  }
 0x17d   :  { %971 = vsyncmov [#allocation3 + $0x1] }
 0x180   :  { %s972_s30 = vpop.sfrf %971 }
 0x181   :  { %p1309_p11 = scmp.ne.s32.totalorder %s972_s30, 0 }
 0x183   :  { %976 = shalt.err (%p1309_p11)  }
 0x184   :  { %978 = vsyncmov [#allocation3 + $0x2] }
 0x187   :  { %s979_s6 = vpop.sfrf %978 }
 0x188   :  { %p1310_p12 = scmp.ne.s32.totalorder %s979_s6, 0 }
 0x18a   :  { %983 = shalt.err (%p1310_p12)  }
 0x18b   :  { %985 = vsyncmov [#allocation3 + $0x3] }
 0x18e   :  { %s986_s7 = vpop.sfrf %985 }
 0x18f   :  { %p1311_p13 = scmp.ne.s32.totalorder %s986_s7, 0 }
 0x191   :  { %990 = shalt.err (%p1311_p13)  }
 0x192   :  { %992 = vsyncmov [#allocation3 + $0x4] }
 0x195   :  { %s993_s27 = vpop.sfrf %992 }
 0x196   :  { %p1312_p0 = scmp.ne.s32.totalorder %s993_s27, 0 }
 0x198   :  { %997 = shalt.err (%p1312_p0)  }
 0x199   :  { %999 = vsyncmov [#allocation3 + $0x5] }
 0x19c   :  { %s1000_s1 = vpop.sfrf %999 }
 0x19d   :  { %p1313_p1 = scmp.ne.s32.totalorder %s1000_s1, 0 }
 0x19f   :  { %1004 = shalt.err (%p1313_p1)  }
 0x1a0   :  { %1006 = vsyncmov [#allocation3 + $0x6] }
 0x1a3   :  { %s1007_s2 = vpop.sfrf %1006 }
 0x1a4   :  { %p1314_p2 = scmp.ne.s32.totalorder %s1007_s2, 0 }
 0x1a6   :  { %1011 = shalt.err (%p1314_p2)  }
 0x1a7   :  { %1013 = vsyncmov [#allocation3 + $0x7] }
 0x1aa   :  { %s1014_s3 = vpop.sfrf %1013 }
 0x1ab   :  { %p1315_p3 = scmp.ne.s32.totalorder %s1014_s3, 0 }
 0x1ad   :  { %1018 = shalt.err (%p1315_p3)  }
 0x1ae   :  { %1020 = vsyncmov [#allocation3 + $0x8] }
 0x1b1   :  { %s1021_s5 = vpop.sfrf %1020 }
 0x1b2   :  { %p1316_p4 = scmp.ne.s32.totalorder %s1021_s5, 0 }
 0x1b4   :  { %1025 = shalt.err (%p1316_p4)  }
 0x1b5   :  { %1027 = vsyncmov [#allocation3 + $0x9] }
 0x1b8   :  { %s1028_s23 = vpop.sfrf %1027 }
 0x1b9   :  { %p1317_p5 = scmp.ne.s32.totalorder %s1028_s23, 0 }
 0x1bb   :  { %1032 = shalt.err (%p1317_p5)  }

</bundles_post_ra>
